<compile_context>
chip_gen: v7x
topology: tpu7x:2x2x1
jax: 0.10.0
libtpu: 0.0.40
codegen_flags: <defaults>
</compile_context>

<pallas_src>
import functools

import jax
import jax.numpy as jnp
from jax.experimental import pallas as pl
from jax.experimental.pallas import tpu as pltpu

BACKGROUND_ID = 0   # VOC_CLASSES_LABEL_TO_ID['background']
_NEG_SENTINEL = -1e30


def _round_up(x, m):
    return (x + m - 1) // m * m


def _cdiv(a, b):
    return -(-a // b)


def _multibox_kernel(cls_ref, ploc_ref, tloc_ref, clf_ref,
                     negce_ref, part_ref, *, num_anchors):
    """One grid step processes a lane-dense block of TM anchors.

    cls_ref : (1, TM) int32   target class ids (pad rows excluded via index)
    ploc_ref: (4, TM) f32     predicted box regression
    tloc_ref: (4, TM) f32     target box regression
    clf_ref : (C, TM)         class logits (bf16 or f32; upcast in-kernel)
    negce_ref: (1, TM) f32    per-anchor negative CE (sentinel elsewhere)
    part_ref : (1, 1, 128) f32 per-block partial sums in lanes 0..3
    """
    TM = cls_ref.shape[-1]
    col = (jax.lax.broadcasted_iota(jnp.int32, (1, TM), 1)
           + pl.program_id(0) * TM)
    valid = col < num_anchors                            # (1, TM) bool

    tgt = cls_ref[...]                                   # (1, TM) int32
    pos = jnp.logical_and(valid, tgt != BACKGROUND_ID)
    neg = jnp.logical_and(valid, tgt == BACKGROUND_ID)

    npos = jnp.sum(jnp.where(pos, 1.0, 0.0))             # scalar f32
    nneg = jnp.sum(jnp.where(neg, 1.0, 0.0))

    # L1 regression loss over positive anchors (sum reduction).
    diff = jnp.abs(ploc_ref[...].astype(jnp.float32)
                   - tloc_ref[...].astype(jnp.float32))  # (4, TM)
    l1 = jnp.sum(jnp.where(pos, diff, 0.0))              # pos broadcasts over 4

    # Per-anchor cross entropy: logsumexp(logits) - logits[target].
    logits = clf_ref[...].astype(jnp.float32)            # (C, TM)
    mx = jnp.max(logits, axis=0, keepdims=True)          # (1, TM)
    lse = mx + jnp.log(jnp.sum(jnp.exp(logits - mx), axis=0, keepdims=True))
    cls_iota = jax.lax.broadcasted_iota(jnp.int32, logits.shape, 0)
    picked = jnp.sum(jnp.where(cls_iota == tgt, logits, 0.0),
                     axis=0, keepdims=True)               # (1, TM)
    ce = lse - picked                                     # (1, TM)

    posce = jnp.sum(jnp.where(pos, ce, 0.0))

    # Lane-dense per-anchor negative CE; positives / padding get the sentinel
    # so they can never be selected by the hard-negative top-k outside.
    negce_ref[...] = jnp.where(neg, ce, _NEG_SENTINEL)

    # Per-block partial sums packed into lanes 0..3.
    lane = jax.lax.broadcasted_iota(jnp.int32, part_ref.shape, 2)
    part_ref[...] = jnp.where(lane == 0, l1,
                    jnp.where(lane == 1, posce,
                    jnp.where(lane == 2, npos,
                    jnp.where(lane == 3, nneg, 0.0))))


@functools.partial(jax.jit,
                   static_argnames=("block_rows", "hard_neg_cap",
                                    "logits_dtype"))
def multibox_loss(pred_loc, pred_clf, target_loc, target_cls,
                  block_rows=8192, hard_neg_cap=8192,
                  logits_dtype=jnp.bfloat16):
    """pred_loc (B,N,4), pred_clf (B,N,C), target_loc (B,N,4),
    target_cls (B,N,1) int.  Returns (loss_for_cls, loss_for_loc) scalars."""
    B, N, C = pred_clf.shape
    M = B * N

    # Block sizing: large blocks amortize the ~0.35us/step grid overhead; when
    # more than one block is needed, round the block count up to even so the
    # "parallel" grid axis can shard across v7x's 2 TensorCores.
    g = max(1, _cdiv(M, block_rows))
    if g > 1 and g % 2:
        g += 1
    TM = min(_round_up(_cdiv(M, g), 128), _round_up(M, 128))
    G = _cdiv(M, TM)
    M_pad = G * TM
    pad = M_pad - M

    # Lane-dense transposed layouts: anchor axis last.  The pad + transpose
    # (+ bf16 cast for clf) fuse into a single XLA fusion per array.
    cls_t = jnp.pad(target_cls.reshape(M).astype(jnp.int32),
                    (0, pad)).reshape(1, M_pad)

    def _feat_major(x, d, dtype):
        x2 = x.reshape(M, d).astype(dtype)
        x2 = jnp.pad(x2, ((0, pad), (0, 0)))
        return x2.T                                       # (d, M_pad)

    ploc_t = _feat_major(pred_loc, 4, jnp.float32)
    tloc_t = _feat_major(target_loc, 4, jnp.float32)
    clf_t = _feat_major(pred_clf, C, logits_dtype)        # bf16 halves HBM read

    kernel = functools.partial(_multibox_kernel, num_anchors=M)
    negce, partials = pl.pallas_call(
        kernel,
        out_shape=(
            jax.ShapeDtypeStruct((1, M_pad), jnp.float32),   # per-anchor neg CE
            jax.ShapeDtypeStruct((G, 1, 128), jnp.float32),  # per-block partials
        ),
        grid=(G,),
        in_specs=[
            pl.BlockSpec((1, TM), lambda i: (0, i)),
            pl.BlockSpec((4, TM), lambda i: (0, i)),
            pl.BlockSpec((4, TM), lambda i: (0, i)),
            pl.BlockSpec((C, TM), lambda i: (0, i)),
        ],
        out_specs=(
            pl.BlockSpec((1, TM), lambda i: (0, i)),
            pl.BlockSpec((1, 1, 128), lambda i: (i, 0, 0)),
        ),
        compiler_params=pltpu.CompilerParams(
            dimension_semantics=("parallel",)),
    )(cls_t, ploc_t, tloc_t, clf_t)

    sums = jnp.sum(partials, axis=(0, 1))                 # (128,)
    l1_sum = sums[0]
    pos_ce_sum = sums[1]
    # f32 partial sums of counts are exact for < 2**24 anchors (fine at scale).
    num_pos = sums[2].astype(jnp.int32)
    num_neg = sums[3].astype(jnp.int32)

    # Hard-negative mining: k = min(3*num_pos, num_neg) largest negative CEs.
    # k is data-dependent, so selection runs in plain JAX on the lane-dense
    # neg-CE vector.  A static cap bounds the top_k; an exact full-sort
    # fallback runs only if k exceeds the cap, so results match PyTorch always.
    k = jnp.minimum(3 * num_pos, num_neg)
    neg_ce = negce.reshape(M_pad)
    K = min(int(hard_neg_cap), M_pad)

    def _topk_sum(vals, kk):
        idx = jax.lax.iota(jnp.int32, vals.shape[0])
        return jnp.sum(jnp.where(idx < kk, vals, 0.0))

    def _capped(nce):
        vals, _ = jax.lax.top_k(nce, K)
        return _topk_sum(vals, k)

    def _full(nce):
        vals = -jnp.sort(-nce)                            # descending
        return _topk_sum(vals, k)

    if K >= M_pad:
        topk_neg_sum = _full(neg_ce)
    else:
        topk_neg_sum = jax.lax.cond(k <= K, _capped, _full, neg_ce)

    denom_cls = jnp.maximum(num_pos + k, 1).astype(jnp.float32)
    denom_loc = jnp.maximum(num_pos, 1).astype(jnp.float32)
    loss_for_cls = (pos_ce_sum + topk_neg_sum) / denom_cls
    loss_for_loc = l1_sum / denom_loc

    has_pos = num_pos > 0
    loss_for_cls = jnp.where(has_pos, loss_for_cls, 0.0)
    loss_for_loc = jnp.where(has_pos, loss_for_loc, 0.0)
    return loss_for_cls, loss_for_loc


def _reference_multibox_loss(pred_loc, pred_clf, target_loc, target_cls):
    """Pure-JAX reference mirroring the PyTorch forward."""
    B, N, C = pred_clf.shape
    tgt = target_cls.reshape(B * N).astype(jnp.int32)
    pos = tgt != BACKGROUND_ID
    neg = jnp.logical_not(pos)
    num_pos = jnp.sum(pos.astype(jnp.int32))
    num_neg = jnp.sum(neg.astype(jnp.int32))

    pl_ = pred_loc.reshape(B * N, 4).astype(jnp.float32)
    tl_ = target_loc.reshape(B * N, 4).astype(jnp.float32)
    l1_sum = jnp.sum(jnp.abs(pl_ - tl_) * pos[:, None].astype(jnp.float32))

    logits = pred_clf.reshape(B * N, C).astype(jnp.float32)
    logp = jax.nn.log_softmax(logits, axis=-1)
    ce = -jnp.take_along_axis(logp, tgt[:, None], axis=-1)[:, 0]
    pos_ce_sum = jnp.sum(jnp.where(pos, ce, 0.0))

    k = jnp.minimum(3 * num_pos, num_neg)
    neg_ce = jnp.where(neg, ce, -1e30)
    sorted_neg = jnp.flip(jnp.sort(neg_ce))
    topk_sum = jnp.sum(jnp.where(jnp.arange(B * N) < k, sorted_neg, 0.0))

    loss_cls = (pos_ce_sum + topk_sum) / jnp.maximum(num_pos + k, 1)
    loss_loc = l1_sum / jnp.maximum(num_pos, 1)
    has_pos = num_pos > 0
    return jnp.where(has_pos, loss_cls, 0.0), jnp.where(has_pos, loss_loc, 0.0)


if __name__ == "__main__":
    import numpy as np

    # Small stand-ins for (#batch, 8723, num_classes); N chosen so that
    # M = B*N is NOT a multiple of 128, exercising the ragged-tail path.
    B, N, C = 2, 300, 8
    key = jax.random.PRNGKey(0)
    k1, k2, k3, k4 = jax.random.split(key, 4)

    pred_loc = jax.random.normal(k1, (B, N, 4), dtype=jnp.float32)
    pred_clf = jax.random.normal(k2, (B, N, C), dtype=jnp.float32)
    target_loc = jax.random.normal(k3, (B, N, 4), dtype=jnp.float32)
    # class id 0 == background; make negatives common (SSD-like)
    raw = jax.random.randint(k4, (B, N, 1), 0, 4 * C, dtype=jnp.int32)
    target_cls = jnp.where(raw < C, raw, 0).astype(jnp.int32)

    ref_cls, ref_loc = _reference_multibox_loss(pred_loc, pred_clf,
                                                target_loc, target_cls)

    # 1) f32-logits path, single block: tight tolerance vs f32 reference.
    out_cls, out_loc = multibox_loss(pred_loc, pred_clf, target_loc,
                                     target_cls, logits_dtype=jnp.float32)
    jax.block_until_ready((out_cls, out_loc))
    np.testing.assert_allclose(np.asarray(out_cls), np.asarray(ref_cls),
                               rtol=1e-4, atol=1e-4)
    np.testing.assert_allclose(np.asarray(out_loc), np.asarray(ref_loc),
                               rtol=1e-4, atol=1e-4)

    # 2) Default bf16-logits path vs a reference fed bf16-rounded logits.
    ref_cls_bf, ref_loc_bf = _reference_multibox_loss(
        pred_loc, pred_clf.astype(jnp.bfloat16).astype(jnp.float32),
        target_loc, target_cls)
    out_cls_bf, out_loc_bf = multibox_loss(pred_loc, pred_clf,
                                           target_loc, target_cls)
    jax.block_until_ready((out_cls_bf, out_loc_bf))
    np.testing.assert_allclose(np.asarray(out_cls_bf), np.asarray(ref_cls_bf),
                               rtol=1e-4, atol=1e-4)
    np.testing.assert_allclose(np.asarray(out_loc_bf), np.asarray(ref_loc_bf),
                               rtol=1e-4, atol=1e-4)

    # 3) Multi-block grid + small hard_neg_cap (forces the exact full-sort
    #    fallback through lax.cond) — exercises per-block partials + padding.
    out_cls_mb, out_loc_mb = multibox_loss(
        pred_loc, pred_clf, target_loc, target_cls,
        block_rows=128, hard_neg_cap=8, logits_dtype=jnp.float32)
    jax.block_until_ready((out_cls_mb, out_loc_mb))
    np.testing.assert_allclose(np.asarray(out_cls_mb), np.asarray(ref_cls),
                               rtol=1e-4, atol=1e-4)
    np.testing.assert_allclose(np.asarray(out_loc_mb), np.asarray(ref_loc),
                               rtol=1e-4, atol=1e-4)

    print("KERNEL_OK")
</pallas_src>

<mosaic_0001>
module attributes {stable_mosaic.version = 11 : i64} {
  func.func @_multibox_kernel(%arg0: i32, %arg1: memref<1x640xi32, #tpu.memory_space<vmem>>, %arg2: memref<4x640xf32, #tpu.memory_space<vmem>>, %arg3: memref<4x640xf32, #tpu.memory_space<vmem>>, %arg4: memref<8x640xf32, #tpu.memory_space<vmem>>, %arg5: memref<1x640xf32, #tpu.memory_space<vmem>>, %arg6: memref<1x1x128xf32, #tpu.memory_space<vmem>>) attributes {dimension_semantics = [#tpu.dimension_semantics<parallel>], iteration_bounds = array<i64: 1>, scalar_prefetch = 0 : i64, scratch_operands = 0 : i64, tpu.core_type = #tpu.core_type<tc>, window_params = [{transform_indices = @transform_0, window_bounds = array<i64: 1, 640>}, {transform_indices = @transform_1, window_bounds = array<i64: 4, 640>}, {transform_indices = @transform_2, window_bounds = array<i64: 4, 640>}, {transform_indices = @transform_3, window_bounds = array<i64: 8, 640>}, {transform_indices = @transform_4, window_bounds = array<i64: 1, 640>}, {transform_indices = @transform_5, window_bounds = array<i64: 1, 1, 128>}]} {
    %0 = tpu.iota {dimensions = array<i32: 1>} : vector<1x640xi32>
    %c640_i32 = arith.constant 640 : i32
    %1 = arith.muli %arg0, %c640_i32 : i32
    %2 = vector.broadcast %1 : i32 to vector<1x640xi32>
    %3 = arith.addi %0, %2 : vector<1x640xi32>
    %c600_i32 = arith.constant 600 : i32
    %4 = vector.broadcast %c600_i32 : i32 to vector<1x640xi32>
    %5 = arith.cmpi slt, %3, %4 : vector<1x640xi32>
    %c0 = arith.constant 0 : index
    %c0_0 = arith.constant 0 : index
    %6 = vector.load %arg1[%c0, %c0_0] : memref<1x640xi32, #tpu.memory_space<vmem>>, vector<1x640xi32>
    %c0_i32 = arith.constant 0 : i32
    %7 = vector.broadcast %c0_i32 : i32 to vector<1x640xi32>
    %8 = arith.cmpi ne, %6, %7 : vector<1x640xi32>
    %9 = arith.andi %5, %8 : vector<1x640xi1>
    %c0_i32_1 = arith.constant 0 : i32
    %10 = vector.broadcast %c0_i32_1 : i32 to vector<1x640xi32>
    %11 = arith.cmpi eq, %6, %10 : vector<1x640xi32>
    %12 = arith.andi %5, %11 : vector<1x640xi1>
    %cst = arith.constant 1.000000e+00 : f32
    %cst_2 = arith.constant 0.000000e+00 : f32
    %13 = vector.broadcast %cst : f32 to vector<1x640xf32>
    %14 = vector.broadcast %cst_2 : f32 to vector<1x640xf32>
    %15 = arith.select %9, %13, %14 : vector<1x640xi1>, vector<1x640xf32>
    %16 = vector.shape_cast %15 : vector<1x640xf32> to vector<1x1x640xf32>
    %cst_3 = arith.constant dense<0.000000e+00> : vector<1xf32>
    %17 = vector.multi_reduction <add>, %16, %cst_3 [1, 2] : vector<1x1x640xf32> to vector<1xf32>
    %18 = vector.shape_cast %17 : vector<1xf32> to vector<1x1x1xf32>
    %19 = vector.extract %18[0, 0, 0] : f32 from vector<1x1x1xf32>
    %cst_4 = arith.constant 1.000000e+00 : f32
    %cst_5 = arith.constant 0.000000e+00 : f32
    %20 = vector.broadcast %cst_4 : f32 to vector<1x640xf32>
    %21 = vector.broadcast %cst_5 : f32 to vector<1x640xf32>
    %22 = arith.select %12, %20, %21 : vector<1x640xi1>, vector<1x640xf32>
    %23 = vector.shape_cast %22 : vector<1x640xf32> to vector<1x1x640xf32>
    %cst_6 = arith.constant dense<0.000000e+00> : vector<1xf32>
    %24 = vector.multi_reduction <add>, %23, %cst_6 [1, 2] : vector<1x1x640xf32> to vector<1xf32>
    %25 = vector.shape_cast %24 : vector<1xf32> to vector<1x1x1xf32>
    %26 = vector.extract %25[0, 0, 0] : f32 from vector<1x1x1xf32>
    %c0_7 = arith.constant 0 : index
    %c0_8 = arith.constant 0 : index
    %27 = vector.load %arg2[%c0_7, %c0_8] : memref<4x640xf32, #tpu.memory_space<vmem>>, vector<4x640xf32>
    %c0_9 = arith.constant 0 : index
    %c0_10 = arith.constant 0 : index
    %28 = vector.load %arg3[%c0_9, %c0_10] : memref<4x640xf32, #tpu.memory_space<vmem>>, vector<4x640xf32>
    %29 = arith.subf %27, %28 : vector<4x640xf32>
    %30 = math.absf %29 : vector<4x640xf32>
    %cst_11 = arith.constant 0.000000e+00 : f32
    %31 = vector.shape_cast %9 : vector<1x640xi1> to vector<1x640xi1>
    %32 = vector.broadcast %31 : vector<1x640xi1> to vector<4x640xi1>
    %33 = vector.broadcast %cst_11 : f32 to vector<4x640xf32>
    %34 = arith.select %32, %30, %33 : vector<4x640xi1>, vector<4x640xf32>
    %35 = vector.shape_cast %34 : vector<4x640xf32> to vector<1x4x640xf32>
    %cst_12 = arith.constant dense<0.000000e+00> : vector<1xf32>
    %36 = vector.multi_reduction <add>, %35, %cst_12 [1, 2] : vector<1x4x640xf32> to vector<1xf32>
    %37 = vector.shape_cast %36 : vector<1xf32> to vector<1x1x1xf32>
    %38 = vector.extract %37[0, 0, 0] : f32 from vector<1x1x1xf32>
    %c0_13 = arith.constant 0 : index
    %c0_14 = arith.constant 0 : index
    %39 = vector.load %arg4[%c0_13, %c0_14] : memref<8x640xf32, #tpu.memory_space<vmem>>, vector<8x640xf32>
    %cst_15 = arith.constant dense<0xFF800000> : vector<640xf32>
    %40 = vector.multi_reduction <maximumf>, %39, %cst_15 [0] : vector<8x640xf32> to vector<640xf32>
    %41 = vector.shape_cast %40 : vector<640xf32> to vector<1x640xf32>
    %42 = vector.broadcast %41 : vector<1x640xf32> to vector<8x640xf32>
    %43 = arith.subf %39, %42 : vector<8x640xf32>
    %44 = math.exp %43 : vector<8x640xf32>
    %cst_16 = arith.constant dense<0.000000e+00> : vector<640xf32>
    %45 = vector.multi_reduction <add>, %44, %cst_16 [0] : vector<8x640xf32> to vector<640xf32>
    %46 = vector.shape_cast %45 : vector<640xf32> to vector<1x640xf32>
    %47 = math.log %46 : vector<1x640xf32>
    %48 = arith.addf %41, %47 : vector<1x640xf32>
    %49 = tpu.iota {dimensions = array<i32: 0>} : vector<8x640xi32>
    %50 = vector.broadcast %6 : vector<1x640xi32> to vector<8x640xi32>
    %51 = arith.cmpi eq, %49, %50 : vector<8x640xi32>
    %cst_17 = arith.constant 0.000000e+00 : f32
    %52 = vector.broadcast %cst_17 : f32 to vector<8x640xf32>
    %53 = arith.select %51, %39, %52 : vector<8x640xi1>, vector<8x640xf32>
    %cst_18 = arith.constant dense<0.000000e+00> : vector<640xf32>
    %54 = vector.multi_reduction <add>, %53, %cst_18 [0] : vector<8x640xf32> to vector<640xf32>
    %55 = vector.shape_cast %54 : vector<640xf32> to vector<1x640xf32>
    %56 = arith.subf %48, %55 : vector<1x640xf32>
    %cst_19 = arith.constant 0.000000e+00 : f32
    %57 = vector.broadcast %cst_19 : f32 to vector<1x640xf32>
    %58 = arith.select %9, %56, %57 : vector<1x640xi1>, vector<1x640xf32>
    %59 = vector.shape_cast %58 : vector<1x640xf32> to vector<1x1x640xf32>
    %cst_20 = arith.constant dense<0.000000e+00> : vector<1xf32>
    %60 = vector.multi_reduction <add>, %59, %cst_20 [1, 2] : vector<1x1x640xf32> to vector<1xf32>
    %61 = vector.shape_cast %60 : vector<1xf32> to vector<1x1x1xf32>
    %62 = vector.extract %61[0, 0, 0] : f32 from vector<1x1x1xf32>
    %cst_21 = arith.constant -1.000000e+30 : f32
    %63 = vector.broadcast %cst_21 : f32 to vector<1x640xf32>
    %64 = arith.select %12, %56, %63 : vector<1x640xi1>, vector<1x640xf32>
    %c0_22 = arith.constant 0 : index
    %c0_23 = arith.constant 0 : index
    %65 = vector.load %arg5[%c0_22, %c0_23] : memref<1x640xf32, #tpu.memory_space<vmem>>, vector<1x640xf32>
    tpu.vector_store %arg5[%c0_22, %c0_23], %64 {strides = array<i32>} : memref<1x640xf32, #tpu.memory_space<vmem>>, vector<1x640xf32>,
    %66 = tpu.iota {dimensions = array<i32: 2>} : vector<1x1x128xi32>
    %c0_i32_24 = arith.constant 0 : i32
    %67 = vector.broadcast %c0_i32_24 : i32 to vector<1x1x128xi32>
    %68 = arith.cmpi eq, %66, %67 : vector<1x1x128xi32>
    %c1_i32 = arith.constant 1 : i32
    %69 = vector.broadcast %c1_i32 : i32 to vector<1x1x128xi32>
    %70 = arith.cmpi eq, %66, %69 : vector<1x1x128xi32>
    %c2_i32 = arith.constant 2 : i32
    %71 = vector.broadcast %c2_i32 : i32 to vector<1x1x128xi32>
    %72 = arith.cmpi eq, %66, %71 : vector<1x1x128xi32>
    %c3_i32 = arith.constant 3 : i32
    %73 = vector.broadcast %c3_i32 : i32 to vector<1x1x128xi32>
    %74 = arith.cmpi eq, %66, %73 : vector<1x1x128xi32>
    %cst_25 = arith.constant 0.000000e+00 : f32
    %75 = vector.broadcast %26 : f32 to vector<1x1x128xf32>
    %76 = vector.broadcast %cst_25 : f32 to vector<1x1x128xf32>
    %77 = arith.select %74, %75, %76 : vector<1x1x128xi1>, vector<1x1x128xf32>
    %78 = vector.broadcast %19 : f32 to vector<1x1x128xf32>
    %79 = arith.select %72, %78, %77 : vector<1x1x128xi1>, vector<1x1x128xf32>
    %80 = vector.broadcast %62 : f32 to vector<1x1x128xf32>
    %81 = arith.select %70, %80, %79 : vector<1x1x128xi1>, vector<1x1x128xf32>
    %82 = vector.broadcast %38 : f32 to vector<1x1x128xf32>
    %83 = arith.select %68, %82, %81 : vector<1x1x128xi1>, vector<1x1x128xf32>
    %c0_26 = arith.constant 0 : index
    %c0_27 = arith.constant 0 : index
    %c0_28 = arith.constant 0 : index
    %84 = vector.load %arg6[%c0_26, %c0_27, %c0_28] : memref<1x1x128xf32, #tpu.memory_space<vmem>>, vector<1x1x128xf32>
    tpu.vector_store %arg6[%c0_26, %c0_27, %c0_28], %83 {strides = array<i32>} : memref<1x1x128xf32, #tpu.memory_space<vmem>>, vector<1x1x128xf32>,
    return
  }
  func.func @transform_0(%arg0: i32) -> (i32, i32) {
    %c0_i32 = arith.constant 0 : i32
    %c0_i32_0 = arith.constant 0 : i32
    return %c0_i32, %arg0 : i32, i32
  }
  func.func @transform_1(%arg0: i32) -> (i32, i32) {
    %c0_i32 = arith.constant 0 : i32
    %c0_i32_0 = arith.constant 0 : i32
    return %c0_i32, %arg0 : i32, i32
  }
  func.func @transform_2(%arg0: i32) -> (i32, i32) {
    %c0_i32 = arith.constant 0 : i32
    %c0_i32_0 = arith.constant 0 : i32
    return %c0_i32, %arg0 : i32, i32
  }
  func.func @transform_3(%arg0: i32) -> (i32, i32) {
    %c0_i32 = arith.constant 0 : i32
    %c0_i32_0 = arith.constant 0 : i32
    return %c0_i32, %arg0 : i32, i32
  }
  func.func @transform_4(%arg0: i32) -> (i32, i32) {
    %c0_i32 = arith.constant 0 : i32
    %c0_i32_0 = arith.constant 0 : i32
    return %c0_i32, %arg0 : i32, i32
  }
  func.func @transform_5(%arg0: i32) -> (i32, i32, i32) {
    %c0_i32 = arith.constant 0 : i32
    %c0_i32_0 = arith.constant 0 : i32
    %c0_i32_1 = arith.constant 0 : i32
    return %arg0, %c0_i32, %c0_i32_0 : i32, i32, i32
  }
}

</mosaic_0001>

<bundles_post_ra>
// kernel: multibox_loss.1
= control target key start
LH: loop header
LB: loop body
LE: loop exit
PB: predicated region body
PF: predicated region fallthrough
CT: control target
= control target key end

     0   :  { %v19_v0 = vlaneseq  ;;  %v513_v6 = vmov 0   ;;  %vm107_vm2 = vcmask 1040384   ;;  %v514_v28 = vmov 0.0   ;;  %s889_s0 = inlined_call_operand.vmem [shape: s32[1,640], index: 0, kind: input, shape index: {}]   ;;  %s890_s3 = inlined_call_operand.vmem [shape: f32[8,640], index: 3, kind: input, shape index: {}]   ;;  %s891_s1 = inlined_call_operand.vmem [shape: f32[4,640], index: 1, kind: input, shape index: {}]   ;;  %s892_s2 = inlined_call_operand.vmem [shape: f32[4,640], index: 2, kind: input, shape index: {}]   ;;  %s893_s4 = inlined_call_operand.vmem [shape: f32[1,640], index: 4, kind: output, shape index: {0}]   ;;  %s894_s5 = inlined_call_operand.vmem [shape: f32[1,1,128], index: 5, kind: output, shape index: {1}]  }
   0x1   :  { %v549_v1 = vld [vmem:[%s889_s0] sm:$0x1f]  ;;  %v559_v3 = vld [vmem:[%s890_s3 + $0x8] sm:$0xff]  ;;  %v669_v59 = vld [vmem:[%s890_s3 + $0x10] sm:$0xff] }
   0x2   :  { %v554_v2 = vld [vmem:[%s890_s3] sm:$0xff]  ;;  %v562_v4 = vand.u32 127, %v19_v0  ;;  %vm38_vm0 = vcmp.ne.s32.totalorder %v549_v1, 0  ;;  %v566_v5 = vshrl.u32 %v19_v0, 7  ;;  %vm70_vm1 = vcmp.eq.s32.totalorder %v549_v1, 0  ;;  %v674_v60 = vld [vmem:[%s890_s3 + $0x18] sm:$0xff] }
   0x3   :  { %v39_v7 = vsel %vm38_vm0, 1, %v513_v6  ;;  %v226_v8 = vrot.slane %v554_v2, 4  ;;  %v232_v9 = vrot.slane %v559_v3, 4  ;;  %v71_v19 = vsel %vm70_vm1, 1, %v513_v6 }
   0x4   :  { %v24_v10 = vadd.s32 512, %v562_v4  ;;  %v574_v11 = vsub.s32 0, %v566_v5  ;;  %v577_v12 = vsub.s32 1, %v566_v5  ;;  %v580_v13 = vsub.s32 2, %v566_v5 }
   0x5   :  { %v583_v14 = vsub.s32 3, %v566_v5  ;;  %v586_v15 = vsub.s32 4, %v566_v5  ;;  %v227_v22 = vmax.f32 %v554_v2, %v226_v8  ;;  %v233_v26 = vmax.f32 %v559_v3, %v232_v9  ;;  %v683_v8 = vld [vmem:[%s890_s3 + $0x20] sm:$0xff] }
   0x6   :  { %v43_v16 = vrot.slane %v39_v7, %v574_v11  ;;  %v47_v17 = vrot.slane %v39_v7, %v577_v12  ;;  %v51_v18 = vrot.slane %v39_v7, %v580_v13  ;;  %vm36_vm3 = vcmp.lt.s32.totalorder %v24_v10, 600 }
   0x7   :  { %v55_v20 = vrot.slane %v39_v7, %v583_v14  ;;  %v59_v21 = vrot.slane %v39_v7, %v586_v15  ;;  %v75_v41 = vrot.slane %v71_v19, %v574_v11  ;;  %v79_v42 = vrot.slane %v71_v19, %v577_v12 }
   0x8   :  { %vm595_vm4 = vcmp.ne.s32.totalorder %v43_v16, 0  ;;  %vm599_vm5 = vcmp.ne.s32.totalorder %v47_v17, 0  ;;  %vm603_vm6 = vcmp.ne.s32.totalorder %v51_v18, 0  ;;  %v83_v44 = vrot.slane %v71_v19, %v580_v13 }
   0x9   :  { %vm608_vm7 = vcmp.ne.s32.totalorder %v55_v20, 0  ;;  %vm64_vm8 = vcmp.ne.s32.totalorder %v59_v21, 0  ;;  %v102_v29 = vsel %vm595_vm4, 1.0, %v514_v28  ;;  %v103_v30 = vsel %vm599_vm5, 1.0, %v514_v28 }
   0xa   :  { %vm617_vm9 = vmand %vm36_vm3, %vm64_vm8  ;;  %v104_v32 = vsel %vm603_vm6, 1.0, %v514_v28  ;;  %v105_v33 = vsel %vm608_vm7, 1.0, %v514_v28  ;;  %v108_v34 = vsel %vm107_vm2, %v102_v29, 0.0  ;;  %v109_v35 = vsel %vm107_vm2, %v103_v30, 0.0 }
   0xb   :  { %v106_v36 = vsel %vm617_vm9, 1.0, %v514_v28  ;;  %v110_v37 = vadd.f32 %v109_v35, %v108_v34  ;;  %v111_v38 = vsel %vm107_vm2, %v104_v32, 0.0  ;;  %v113_v39 = vsel %vm107_vm2, %v105_v33, 0.0 }
   0xc   :  { %v115_v40 = vsel %vm107_vm2, %v106_v36, 0.0  ;;  %v87_v45 = vrot.slane %v71_v19, %v583_v14  ;;  %v91_v46 = vrot.slane %v71_v19, %v586_v15  ;;  %vm637_vm10 = vcmp.ne.s32.totalorder %v75_v41, 0 }
   0xd   :  { %v112_v43 = vadd.f32 %v111_v38, %v110_v37  ;;  %vm641_vm11 = vcmp.ne.s32.totalorder %v79_v42, 0  ;;  %v228_v49 = vrot.slane %v227_v22, 2  ;;  %v234_v50 = vrot.slane %v233_v26, 2  ;;  %v151_v37 = vld [vmem:[%s891_s1 + $0x10] sm:$0xf] }
   0xe   :  { %vm645_vm12 = vcmp.ne.s32.totalorder %v83_v44, 0  ;;  %vm649_vm13 = vcmp.ne.s32.totalorder %v87_v45, 0  ;;  %vm96_vm14 = vcmp.ne.s32.totalorder %v91_v46, 0  ;;  %v126_v55 = vsel %vm637_vm10, 1.0, %v514_v28 }
   0xf   :  { %v114_v51 = vadd.f32 %v113_v39, %v112_v43  ;;  %vm654_vm15 = vmand %vm36_vm3, %vm96_vm14  ;;  %v127_v56 = vsel %vm641_vm11, 1.0, %v514_v28  ;;  %v128_v57 = vsel %vm645_vm12, 1.0, %v514_v28  ;;  %v129_v58 = vsel %vm649_vm13, 1.0, %v514_v28 }
  0x10   :  { %v130_v62 = vsel %vm654_vm15, 1.0, %v514_v28  ;;  %v131_v63 = vsel %vm107_vm2, %v126_v55, 0.0  ;;  %v132_v7 = vsel %vm107_vm2, %v127_v56, 0.0  ;;  %v325_v9 = vrot.slane %v549_v1, %v577_v12 }
  0x11   :  { %v116_v61 = vadd.f32 %v115_v40, %v114_v51  ;;  %v133_v10 = vadd.f32 %v132_v7, %v131_v63  ;;  %v134_v16 = vsel %vm107_vm2, %v128_v57, 0.0  ;;  %v136_v17 = vsel %vm107_vm2, %v129_v58, 0.0 }
  0x12   :  { %v229_v18 = vmax.f32 %v227_v22, %v228_v49  ;;  %v235_v19 = vmax.f32 %v233_v26, %v234_v50  ;;  %v238_v20 = vrot.slane %v669_v59, 4  ;;  %v244_v21 = vrot.slane %v674_v60, 4 }
  0x13   :  { %117 = vadd.xlane.f32.xlu0 %v116_v61  ;;  %v135_v28 = vadd.f32 %v134_v16, %v133_v10  ;;  %v138_v29 = vsel %vm107_vm2, %v130_v62, 0.0  ;;  %v250_v30 = vrot.slane %v683_v8, 4  ;;  %v321_v12 = vrot.slane %v549_v1, %v574_v11 }
  0x14   :  { %v230_v32 = vrot.slane %v229_v18, 1  ;;  %v236_v33 = vrot.slane %v235_v19, 1  ;;  %v239_v34 = vmax.f32 %v669_v59, %v238_v20  ;;  %v245_v35 = vmax.f32 %v674_v60, %v244_v21 }
  0x15   :  { %v329_v22 = vrot.slane %v549_v1, %v580_v13  ;;  %v137_v26 = vadd.f32 %v136_v17, %v135_v28  ;;  %v251_v36 = vmax.f32 %v683_v8, %v250_v30  ;;  %vm701_vm0 = vcmp.eq.s32.totalorder %v566_v5, %v321_v12 }
  0x16   :  { %v705_v38 = vmax.f32 %v229_v18, %v230_v32  ;;  %v707_v39 = vmax.f32 %v235_v19, %v236_v33  ;;  %v240_v40 = vrot.slane %v239_v34, 2  ;;  %v246_v41 = vrot.slane %v245_v35, 2  ;;  %v149_v33 = vld [vmem:[%s891_s1] sm:$0xff] }
  0x17   :  { %v333_v42 = vrot.slane %v549_v1, %v583_v14  ;;  %v139_v43 = vadd.f32 %v138_v29, %v137_v26  ;;  %v252_v44 = vrot.slane %v251_v36, 2  ;;  %vm712_vm1 = vcmp.eq.s32.totalorder %v566_v5, %v325_v9  ;;  %v153_v26 = vld [vmem:[%s892_s2 + $0x8] sm:$0xff] }
  0x18   :  { %v241_v45 = vmax.f32 %v239_v34, %v240_v40  ;;  %v247_v46 = vmax.f32 %v245_v35, %v246_v41  ;;  %v256_v49 = vsub.f32 %v554_v2, %v705_v38  ;;  %v257_v50 = vsub.f32 %v559_v3, %v707_v39  ;;  %v154_v40 = vld [vmem:[%s892_s2 + $0x10] sm:$0xf] }
  0x19   :  { %v337_v51 = vrot.slane %v549_v1, %v586_v15  ;;  %v253_v55 = vmax.f32 %v251_v36, %v252_v44  ;;  %vm723_vm3 = vcmp.eq.s32.totalorder %v566_v5, %v329_v22  ;;  %v343_v56 = vsel %vm701_vm0, %v554_v2, 0.0  ;;  %140 = vadd.xlane.f32.xlu0 %v139_v43 }
  0x1a   :  { %v242_v57 = vrot.slane %v241_v45, 1  ;;  %v248_v58 = vrot.slane %v247_v46, 1  ;;  %v261_v61 = vmul.f32 1.442695, %v256_v49  ;;  %v263_v62 = vmul.f32 1.442695, %v257_v50 }
  0x1b   :  { %v254_v63 = vrot.slane %v253_v55, 1  ;;  %vm341_vm8 = vcmp.eq.s32.totalorder %v566_v5, %v333_v42  ;;  %v344_v1 = vsel %vm712_vm1, %v559_v3, 0.0  ;;  %v348_v9 = vrot.slane %v343_v56, 4 }
  0x1c   :  { %v734_v15 = vmax.f32 %v241_v45, %v242_v57  ;;  %v736_v7 = vmax.f32 %v247_v46, %v248_v58  ;;  %493 = vpow2.f32 %v261_v61  ;;  %v345_v2 = vsel %vm723_vm3, %v669_v59, 0.0 }
  0x1d   :  { %v738_v10 = vmax.f32 %v253_v55, %v254_v63  ;;  %495 = vpow2.f32 %v263_v62  ;;  %vm342_vm14 = vcmp.eq.s32.totalorder %v566_v5, %v337_v51  ;;  %v346_v18 = vsel %vm341_vm8, %v674_v60, 0.0 }
  0x1e   :  { %v258_v16 = vsub.f32 %v669_v59, %v734_v15  ;;  %v259_v17 = vsub.f32 %v674_v60, %v736_v7  ;;  %v354_v19 = vrot.slane %v344_v1, 4  ;;  %v349_v28 = vadd.f32 %v348_v9, %v343_v56  ;;  %v152_v60 = vld [vmem:[%s892_s2] sm:$0xff] }
  0x1f   :  { %v260_v3 = vsub.f32 %v683_v8, %v738_v10  ;;  %v360_v29 = vrot.slane %v345_v2, 4  ;;  %v347_v12 = vsel %vm342_vm14, %v683_v8, 0.0  ;;  %v366_v32 = vrot.slane %v346_v18, 4  ;;  %v150_v8 = vld [vmem:[%s891_s1 + $0x8] sm:$0xff] }
  0x20   :  { %v265_v20 = vmul.f32 1.442695, %v258_v16  ;;  %v267_v21 = vmul.f32 1.442695, %v259_v17  ;;  %v752_v59 = vadd.f32 %v354_v19, %v344_v1  ;;  %v350_v34 = vrot.slane %v349_v28, 2 }
  0x21   :  { %v269_v30 = vmul.f32 1.442695, %v260_v3  ;;  %v760_v35 = vadd.f32 %v360_v29, %v345_v2  ;;  %v372_v22 = vrot.slane %v347_v12, 4  ;;  %v155_v41 = vsub.f32 %v149_v33, %v152_v60 }
  0x22   :  { %497 = vpow2.f32 %v265_v20  ;;  %v356_v44 = vrot.slane %v752_v59, 2  ;;  %v775_v13 = vadd.f32 %v366_v32, %v346_v18  ;;  %v156_v45 = vsub.f32 %v150_v8, %v153_v26 }
  0x23   :  { %499 = vpow2.f32 %v267_v21  ;;  %v777_v49 = vadd.f32 %v350_v34, %v349_v28  ;;  %v362_v50 = vrot.slane %v760_v35, 2  ;;  %v780_v51 = vadd.f32 %v372_v22, %v347_v12 }
  0x24   :  { %501 = vpow2.f32 %v269_v30  ;;  %v157_v14 = vsub.f32 %v151_v37, %v154_v40  ;;  %v158_v56 = vand.u32 2147483647, %v155_v41  ;;  %v161_v57 = vsel %vm595_vm4, 1, %v513_v6 }
  0x25   :  { %v159_v61 = vand.u32 2147483647, %v156_v45  ;;  %v162_v62 = vsel %vm599_vm5, 1, %v513_v6  ;;  %v163_v63 = vsel %vm603_vm6, 1, %v513_v6  ;;  %v164_v9 = vsel %vm608_vm7, 1, %v513_v6 }
  0x26   :  { %v494_v36 = vpop.eup %493  ;;  %v165_v2 = vsel %vm617_vm9, 1, %v513_v6  ;;  %v169_v16 = vrot.slane %v161_v57, %v574_v11  ;;  %v173_v18 = vrot.slane %v162_v62, %v574_v11  ;;  %v177_v19 = vrot.slane %v163_v63, %v574_v11 }
  0x27   :  { %v496_v42 = vpop.eup %495  ;;  %v271_v43 = vrot.slane %v494_v36, 4  ;;  %v181_v20 = vrot.slane %v164_v9, %v574_v11  ;;  %v160_v30 = vand.u32 2147483647, %v157_v14  ;;  %v185_v12 = vrot.slane %v165_v2, %v574_v11 }
  0x28   :  { %v277_v46 = vrot.slane %v496_v42, 4  ;;  %vm802_vm0 = vcmp.eq.s32.totalorder %v169_v16, 1  ;;  %vm806_vm1 = vcmp.eq.s32.totalorder %v173_v18, 1  ;;  %vm810_vm3 = vcmp.eq.s32.totalorder %v177_v19, 1 }
  0x29   :  { %v272_v55 = vadd.f32 %v494_v36, %v271_v43  ;;  %vm814_vm8 = vcmp.eq.s32.totalorder %v181_v20, 1  ;;  %v193_v41 = vcombine.high %v158_v56, %v158_v56  ;;  %v197_v57 = vsel %vm802_vm0, %v158_v56, 0.0 }
  0x2a   :  { %v278_v58 = vadd.f32 %v496_v42, %v277_v46  ;;  %v194_v46 = vcombine.high %v159_v61, %v159_v61  ;;  %v357_v2 = vadd.f32 %v356_v44, %v752_v59  ;;  %vm825_vm14 = vcmp.eq.s32.totalorder %v185_v12, 1 }
  0x2b   :  { %v273_v1 = vrot.slane %v272_v55, 2  ;;  %vm202_vm0 = vcmask 1043456   ;;  %v201_v59 = vsel %vm825_vm14, %v160_v30, 0.0  ;;  %v368_v12 = vrot.slane %v775_v13, 2 }
  0x2c   :  { %v498_v17 = vpop.eup %497  ;;  %v279_v3 = vrot.slane %v278_v58, 2  ;;  %v200_v56 = vsel %vm814_vm8, %v194_v46, 0.0  ;;  %v203_v19 = vsel %vm202_vm0, %v197_v57, 0.0  ;;  %v352_v6 = vrot.slane %v777_v49, 1 }
  0x2d   :  { %v500_v21 = vpop.eup %499  ;;  %v274_v28 = vadd.f32 %v273_v1, %v272_v55  ;;  %v283_v29 = vrot.slane %v498_v17, 4  ;;  %v199_v1 = vsel %vm810_vm3, %v159_v61, 0.0  ;;  %v374_v34 = vrot.slane %v780_v51, 2 }
  0x2e   :  { %v502_v32 = vpop.eup %501  ;;  %v280_v33 = vadd.f32 %v279_v3, %v278_v58  ;;  %v289_v60 = vrot.slane %v500_v21, 4  ;;  %v198_v58 = vsel %vm806_vm1, %v193_v41, 0.0  ;;  %v206_v61 = vsel %vm202_vm0, %v199_v1, 0.0 }
  0x2f   :  { %v275_v22 = vrot.slane %v274_v28, 1  ;;  %v284_v8 = vadd.f32 %v498_v17, %v283_v29  ;;  %v295_v26 = vrot.slane %v502_v32, 4  ;;  %v204_v20 = vsel %vm202_vm0, %v198_v58, 0.0 }
  0x30   :  { %v281_v37 = vrot.slane %v280_v33, 1  ;;  %v290_v11 = vadd.f32 %v500_v21, %v289_v60  ;;  %v205_v44 = vadd.f32 %v204_v20, %v203_v19  ;;  %v363_v30 = vadd.f32 %v362_v50, %v760_v35 }
  0x31   :  { %v276_v42 = vadd.f32 %v275_v22, %v274_v28  ;;  %v285_v43 = vrot.slane %v284_v8, 2  ;;  %v296_v45 = vadd.f32 %v502_v32, %v295_v26  ;;  %v208_v32 = vsel %vm202_vm0, %v200_v56, 0.0 }
  0x32   :  { %v282_v55 = vadd.f32 %v281_v37, %v280_v33  ;;  %v291_v14 = vrot.slane %v290_v11, 2  ;;  %v207_v60 = vadd.f32 %v206_v61, %v205_v44  ;;  %v210_v22 = vsel %vm202_vm0, %v201_v59, 0.0 }
  0x33   :  { %v286_v62 = vadd.f32 %v285_v43, %v284_v8  ;;  %v297_v63 = vrot.slane %v296_v45, 2  ;;  %503 = vlog2.f32 %v276_v42  ;;  %v358_v8 = vrot.slane %v357_v2, 1 }
  0x34   :  { %v292_v9 = vadd.f32 %v291_v14, %v290_v11  ;;  %505 = vlog2.f32 %v282_v55  ;;  %v209_v26 = vadd.f32 %v208_v32, %v207_v60  ;;  %v369_v36 = vadd.f32 %v368_v12, %v775_v13 }
  0x35   :  { %v287_v17 = vrot.slane %v286_v62, 1  ;;  %v298_v3 = vadd.f32 %v297_v63, %v296_v45  ;;  %v353_v42 = vadd.f32 %v352_v6, %v777_v49  ;;  %v375_v43 = vadd.f32 %v374_v34, %v780_v51 }
  0x36   :  { %v293_v18 = vrot.slane %v292_v9, 1  ;;  %v211_v11 = vadd.f32 %v210_v22, %v209_v26  ;;  %v359_v46 = vadd.f32 %v358_v8, %v357_v2  ;;  %v364_v55 = vrot.slane %v363_v30, 1 }
  0x37   :  { %v288_v21 = vadd.f32 %v287_v17, %v286_v62  ;;  %v299_v28 = vrot.slane %v298_v3, 1  ;;  %v515_v14 = vmov 1966171168   ;;  %v370_v35 = vrot.slane %v369_v36, 1 }
  0x38   :  { %v294_v29 = vadd.f32 %v293_v18, %v292_v9  ;;  %v419_v57 = vunpack.c.l.s4 %v515_v14  ;;  %212 = vadd.xlane.f32.xlu1 %v211_v11  ;;  %v376_v13 = vrot.slane %v375_v43, 1  ;;  %v365_v1 = vadd.f32 %v364_v55, %v363_v30 }
  0x39   :  { %v300_v33 = vadd.f32 %v299_v28, %v298_v3  ;;  %507 = vlog2.f32 %v288_v21  ;;  %v371_v51 = vadd.f32 %v370_v35, %v369_v36 }
  0x3a   :  { %509 = vlog2.f32 %v294_v29  ;;  %v420_v16 = vunpack.c.0.s8 %v419_v57  ;;  %v377_v21 = vadd.f32 %v376_v13, %v375_v43 }
  0x3b   :  { %511 = vlog2.f32 %v300_v33 }
  0x3c   :  { %v423_v59 = vsub.s32 %v420_v16, %v566_v5 }
  0x3d   :  { %v504_v37 = vpop.eup %503 }
  0x3e   :  { %v506_v40 = vpop.eup %505  ;;  %v302_v41 = vmul.f32 0.6931472, %v504_v37 }
  0x3f   :  { %v304_v45 = vmul.f32 0.6931472, %v506_v40 }
  0x40   :  { %v311_v58 = vadd.f32 %v302_v41, %v705_v38 }
  0x41   :  { %v312_v50 = vadd.f32 %v304_v45, %v707_v39 }
  0x42   :  { %v378_v62 = vsub.f32 %v311_v58, %v353_v42 }
  0x43   :  { %v508_v63 = vpop.eup %507  ;;  %v379_v9 = vsub.f32 %v312_v50, %v359_v46 }
  0x44   :  { %v510_v49 = vpop.eup %509  ;;  %v306_v17 = vmul.f32 0.6931472, %v508_v63  ;;  %v406_v2 = vsel %vm637_vm10, %v378_v62, -1e+30  ;;  %v383_v3 = vsel %vm595_vm4, %v378_v62, 0.0  ;;  %vm458_vm4 = vcmp.lt.s32.totalorder %v19_v0, 640 }
  0x45   :  { %v512_v56 = vpop.eup %511  ;;  %v308_v38 = vmul.f32 0.6931472, %v510_v49  ;;  %v407_v39 = vsel %vm641_vm11, %v379_v9, -1e+30  ;;  %v384_v18 = vsel %vm599_vm5, %v379_v9, 0.0  ;;  %v388_v19 = vsel %vm107_vm2, %v383_v3, 0.0 }
  0x46   :  { %v310_v20 = vmul.f32 0.6931472, %v512_v56  ;;  %v313_v61 = vadd.f32 %v306_v17, %v734_v15  ;;  %v389_v47 = vsel %vm107_vm2, %v384_v18, 0.0  ;;  %v416_v23 = vcombine.low %v406_v2, %v407_v39 }
  0x47   :  { %v314_v28 = vadd.f32 %v308_v38, %v736_v7  ;;  %v390_v44 = vadd.f32 %v389_v47, %v388_v19  ;;  %vm463_vm5 = vcmp.eq.s32.totalorder %v562_v4, 2 }
  0x48   :  { %v315_v48 = vadd.f32 %v310_v20, %v738_v10  ;;  %v380_v29 = vsub.f32 %v313_v61, %v365_v1  ;;  %v424_v60 = vrot.slane %v416_v23, %v423_v59 }
  0x49   :  { %v381_v12 = vsub.f32 %v314_v28, %v371_v51 }
  0x4a   :  { %v382_v24 = vsub.f32 %v315_v48, %v377_v21  ;;  %v408_v32 = vsel %vm645_vm12, %v380_v29, -1e+30  ;;  %v385_v15 = vsel %vm603_vm6, %v380_v29, 0.0  ;;  %vm462_vm6 = vcmp.eq.s32.totalorder %v562_v4, 1 }
  0x4b   :  { %v409_v33 = vsel %vm649_vm13, %v381_v12, -1e+30  ;;  %v386_v7 = vsel %vm608_vm7, %v381_v12, 0.0  ;;  %v391_v5 = vsel %vm107_vm2, %v385_v15, 0.0  ;;  %vm461_vm7 = vcmp.eq.s32.totalorder %v562_v4, 0 }
  0x4c   :  { %v410_v10 = vsel %vm654_vm15, %v382_v24, -1e+30  ;;  %v417_v6 = vcombine.low %v408_v32, %v409_v33  ;;  %v387_v52 = vsel %vm617_vm9, %v382_v24, 0.0  ;;  %v392_v34 = vadd.f32 %v391_v5, %v390_v44 }
  0x4d   :  { %v438_v22 = vrot.slane %v410_v10, %v423_v59  ;;  %v393_v25 = vsel %vm107_vm2, %v386_v7, 0.0  ;;  %v395_v53 = vsel %vm107_vm2, %v387_v52, 0.0  ;;  %vm464_vm2 = vcmp.eq.s32.totalorder %v562_v4, 3 }
  0x4e   :  { %v431_v8 = vrot.slane %v417_v6, %v423_v59  ;;  %v394_v30 = vadd.f32 %v393_v25, %v392_v34 }
  0x4f   :  { %v453_v27 = vrot.slane %v438_v22, %v423_v59 }
  0x50   :  { %v439_v26 = vcombine.low %v424_v60, %v431_v8  ;;  %v396_v36 = vadd.f32 %v395_v53, %v394_v30 }
  0x52   :  { %v446_v37 = vrot.slane %v439_v26, %v423_v59  ;;  %397 = vadd.xlane.f32.xlu1 %v396_v36 }
  0x54   :  { %v454_v54 = vcombine.low %v446_v37, %v453_v27 }
  0x56   :  { %460 = vst.msk [vmem:[%s893_s4] sm:$0x1f] %vm458_vm4, %v454_v54 }
  0xa0   :  { %v118_v31 = vpop.xlane.xlu0 %117 }
  0xa1   :  { %v119_v11 = vrot.slane %v118_v31, 4 }
  0xa3   :  { %v120_v40 = vadd.f32 %v119_v11, %v118_v31 }
  0xa5   :  { %v121_v41 = vrot.slane %v120_v40, 2 }
  0xa6   :  { %v141_v42 = vpop.xlane.xlu0 %140 }
  0xa7   :  { %v122_v43 = vadd.f32 %v121_v41, %v120_v40  ;;  %v142_v45 = vrot.slane %v141_v42, 4 }
  0xa9   :  { %v123_v46 = vrot.slane %v122_v43, 1  ;;  %v143_v55 = vadd.f32 %v142_v45, %v141_v42 }
  0xab   :  { %v124_v14 = vadd.f32 %v123_v46, %v122_v43  ;;  %v144_v57 = vrot.slane %v143_v55, 2 }
  0xad   :  { %482 = vpush %v124_v14  ;;  %v145_v58 = vadd.f32 %v144_v57, %v143_v55 }
  0xaf   :  { %v146_v35 = vrot.slane %v145_v58, 1 }
  0xb1   :  { %v147_v0 = vadd.f32 %v146_v35, %v145_v58 }
  0xb3   :  { %484 = vpush %v147_v0 }
  0xc5   :  { %v213_v50 = vpop.xlane.xlu1 %212 }
  0xc6   :  { %v214_v13 = vrot.slane %v213_v50, 4 }
  0xc8   :  { %v215_v62 = vadd.f32 %v214_v13, %v213_v50 }
  0xca   :  { %v216_v63 = vrot.slane %v215_v62, 2 }
  0xcc   :  { %v217_v1 = vadd.f32 %v216_v63, %v215_v62 }
  0xce   :  { %v218_v9 = vrot.slane %v217_v1, 1 }
  0xd0   :  { %v219_v16 = vadd.f32 %v218_v9, %v217_v1 }
  0xd2   :  { %486 = vpush %v219_v16 }
  0xde   :  { %s483_s4 = spop %482 }
  0xdf   :  { %v398_v49 = vpop.xlane.xlu1 %397  ;;  %v467_v18 = vstv %s483_s4 }
  0xe0   :  { %v399_v17 = vrot.slane %v398_v49, 4 }
  0xe2   :  { %v400_v51 = vadd.f32 %v399_v17, %v398_v49 }
  0xe4   :  { %v401_v2 = vrot.slane %v400_v51, 2  ;;  %s485_s15 = spop %484 }
  0xe5   :  { %v465_v39 = vstv %s485_s15 }
  0xe6   :  { %v402_v3 = vadd.f32 %v401_v2, %v400_v51  ;;  %v466_v19 = vsel %vm464_vm2, %v465_v39, 0.0 }
  0xe7   :  { %v468_v20 = vsel %vm463_vm5, %v467_v18, %v466_v19 }
  0xe8   :  { %v403_v56 = vrot.slane %v402_v3, 1 }
  0xea   :  { %v404_v38 = vadd.f32 %v403_v56, %v402_v3 }
  0xec   :  { %488 = vpush %v404_v38 }
 0x103   :  { %s487_s16 = spop %486 }
 0x104   :  { %v471_v21 = vstv %s487_s16 }
 0x11d   :  { %s489_s17 = spop %488 }
 0x11e   :  { %v469_v61 = vstv %s489_s17 }
 0x11f   :  { %v470_v47 = vsel %vm462_vm6, %v469_v61, %v468_v20 }
 0x120   :  { %v472_v28 = vsel %vm461_vm7, %v471_v21, %v470_v47 }
 0x121   :  { %473 = vst [vmem:[%s894_s5] sm:$0x1] %v472_v28 }

</bundles_post_ra>
